<compile_context>
chip_gen: v6e
topology: v6e:2x2x1
jax: 0.10.0
libtpu: 0.0.40
codegen_flags: <defaults>
</compile_context>

<pallas_src>
import functools

import jax
import jax.numpy as jnp
from jax import lax
from jax.experimental import pallas as pl
from jax.experimental.pallas import tpu as pltpu

_LANES = 128


def _kth_smallest(vals, k):
    """Exact k-th (0-based) order statistic of a list of equal-shaped arrays.

    Bitonic compare-exchange network built only from jnp.minimum / jnp.maximum on
    fully packed (rows, 128) slabs — no cross-lane/sublane data movement, and
    O(n log^2 n) VPU ops per pixel instead of the O(n^2) rank selection it replaces.
    Non-power-of-two n is padded with "+inf" sentinels that are pruned at trace time.
    NOTE: like the network itself, NaN inputs are not handled identically to torch.
    """
    n = len(vals)
    if n == 1:
        return vals[0]
    p = 1
    while p < n:
        p *= 2
    work = list(vals) + [None] * (p - n)          # None == +inf sentinel (trace-time)
    size = 2
    while size <= p:
        stride = size // 2
        while stride >= 1:
            for i in range(p):
                j = i ^ stride
                if j <= i:
                    continue
                a, b = work[i], work[j]
                if a is None and b is None:
                    lo, hi = None, None
                elif a is None:
                    lo, hi = b, None
                elif b is None:
                    lo, hi = a, None
                else:
                    lo, hi = jnp.minimum(a, b), jnp.maximum(a, b)
                if (i & size) == 0:               # ascending block
                    work[i], work[j] = lo, hi
                else:                             # descending block
                    work[i], work[j] = hi, lo
            stride //= 2
        size *= 2
    out = work[k]
    assert out is not None                        # k < n, so it is a real value
    return out


def _windowed_median_norm_kernel(x_ref, out_ref, med_ref, mn_ref, mx_ref, *,
                                 cw, k, rows_per_tile, sub_rows, hw, need_mask):
    """Fused: phase 0 = per-pixel channel median + running min/max (kept in VMEM),
    phase 1 = per-image min-max normalization of the resident median image."""
    p = pl.program_id(1)          # 0: median + min/max, 1: normalize + store
    t = pl.program_id(2)          # pixel-row tile within the image
    R = rows_per_tile

    @pl.when((p == 0) & (t == 0))
    def _init():
        mn_ref[...] = jnp.full(mn_ref.shape, jnp.inf, dtype=jnp.float32)
        mx_ref[...] = jnp.full(mx_ref.shape, -jnp.inf, dtype=jnp.float32)

    @pl.when(p == 0)
    def _median_phase():
        r0 = 0
        while r0 < R:                              # static unrolled sub-chunk loop
            rs = min(sub_rows, R - r0)
            # One fully packed (rs, 128) slab per window channel (static slices).
            chans = [x_ref[0, c, r0:r0 + rs, :] for c in range(cw)]
            med = _kth_smallest(chans, k)          # (rs, 128) lower-middle median

            start = t * R + r0
            if R % 8 == 0 and r0 % 8 == 0:
                start = pl.multiple_of(start, 8)
            med_ref[pl.ds(start, rs), :] = med     # resident median image (VMEM)

            if need_mask:
                rowg = t * R + r0 + lax.broadcasted_iota(jnp.int32, (rs, _LANES), 0)
                pix = rowg * _LANES + lax.broadcasted_iota(jnp.int32, (rs, _LANES), 1)
                valid = pix < hw
                med_lo = jnp.where(valid, med, jnp.inf)
                med_hi = jnp.where(valid, med, -jnp.inf)
            else:
                med_lo = med_hi = med

            # Per-lane running min/max; the cross-lane reduce is deferred to phase 1.
            mn_ref[...] = jnp.minimum(mn_ref[...],
                                      jnp.min(med_lo, axis=0, keepdims=True))
            mx_ref[...] = jnp.maximum(mx_ref[...],
                                      jnp.max(med_hi, axis=0, keepdims=True))
            r0 += rs

    @pl.when(p == 1)
    def _normalize_phase():
        mn = jnp.min(mn_ref[...], axis=1, keepdims=True)[0, 0]
        mx = jnp.max(mx_ref[...], axis=1, keepdims=True)[0, 0]
        # Matches torch: (x - mn) / (mx - mn).  Exact scalar reciprocal + multiply;
        # mx == mn yields inf/NaN exactly like the PyTorch module.
        scale = 1.0 / (mx - mn)
        start = t * R
        if R % 8 == 0:
            start = pl.multiple_of(start, 8)
        med = med_ref[pl.ds(start, R), :]          # (R, 128)
        out_ref[0] = (med - mn) * scale            # lane-dense full-tile store


def _pick_rows_per_tile(n_rows, max_rows):
    max_rows = max(8, max_rows)
    if n_rows <= max_rows:
        return n_rows                      # single tile; full-extent block is legal
    r = (max_rows // 8) * 8
    while r >= 8:
        if n_rows % r == 0:
            return r                       # divides: no ragged tile, no masking
        r -= 8
    return (max_rows // 8) * 8             # ragged last tile (masked in kernel)


def segmentation_windowing_forward(hsi_image, window, *, max_rows_per_tile=64,
                                   sub_rows=8):
    """JAX/Pallas equivalent of SegmentationModelWithWindowing preprocessing.

    hsi_image: (N, C, H, W); window: (w0, w1) static Python ints.
    Returns the normalized (N, 1, H, W) float32 image the module feeds to its U-Net.
    """
    N, C, H, W = hsi_image.shape
    w0, w1 = int(window[0]), int(window[1])
    assert 0 <= w0 < w1 <= C
    cw = w1 - w0
    k = (cw - 1) // 2                      # torch.median: lower middle for even cw
    hw = H * W

    x = hsi_image.astype(jnp.float32)
    if (w0, w1) != (0, C):
        # Slice the window up front: the kernel only DMAs / double-buffers cw channels.
        x = x[:, w0:w1]
    x = x.reshape(N, cw, hw)

    n_rows = pl.cdiv(hw, _LANES)
    pad_hw = n_rows * _LANES
    if pad_hw != hw:
        # Rare fallback (H*W not a multiple of 128): pad pixels; the padding is masked
        # out of min/max in-kernel and sliced off below.
        x = jnp.pad(x, ((0, 0), (0, 0), (0, pad_hw - hw)))
    x = x.reshape(N, cw, n_rows, _LANES)   # pixels tiled (sublane, lane) per channel

    R = _pick_rows_per_tile(n_rows, max_rows_per_tile)
    n_tiles = pl.cdiv(n_rows, R)
    need_mask = (n_tiles * R * _LANES) != hw

    kernel = functools.partial(
        _windowed_median_norm_kernel,
        cw=cw, k=k, rows_per_tile=R, sub_rows=sub_rows, hw=hw, need_mask=need_mask)

    # VMEM budget derived from actual block / scratch sizes (portable to v7x).
    in_bytes = cw * R * _LANES * 4
    out_bytes = R * _LANES * 4
    scratch_bytes = n_tiles * R * _LANES * 4 + 2 * _LANES * 4
    vmem_need = 2 * in_bytes + 2 * out_bytes + scratch_bytes + (1 << 20)
    vmem_limit = int(min(64 * 1024 * 1024, max(32 * 1024 * 1024, 2 * vmem_need)))

    norm = pl.pallas_call(
        kernel,
        out_shape=jax.ShapeDtypeStruct((N, n_rows, _LANES), jnp.float32),
        grid_spec=pltpu.PrefetchScalarGridSpec(
            num_scalar_prefetch=0,
            # Grid axes: (image, phase, pixel-row tile).  Both phases live in one
            # pallas_call so the median never round-trips through HBM.
            grid=(N, 2, n_tiles),
            in_specs=[pl.BlockSpec(
                (1, cw, R, _LANES),
                # phase 0 walks the tiles; phase 1 pins the block index so the input
                # is not re-DMAed during normalization.
                lambda n, p, t: (n, 0, t + p * (n_tiles - 1 - t), 0))],
            out_specs=pl.BlockSpec(
                (1, R, _LANES),
                # phase 0 parks on block 0 (never written); phase 1 writes each tile
                # exactly once (contiguous visit), so every block is stored once.
                lambda n, p, t: (n, t * p, 0)),
            scratch_shapes=[
                pltpu.VMEM((n_tiles * R, _LANES), jnp.float32),   # resident median
                pltpu.VMEM((1, _LANES), jnp.float32),             # running per-lane min
                pltpu.VMEM((1, _LANES), jnp.float32),             # running per-lane max
            ]),
        compiler_params=pltpu.CompilerParams(
            dimension_semantics=("parallel", "arbitrary", "arbitrary"),
            vmem_limit_bytes=vmem_limit),
        cost_estimate=pl.CostEstimate(
            flops=int(4 * N * hw * cw * max(1, cw.bit_length()) ** 2),
            transcendentals=0,
            bytes_accessed=int(N * cw * hw * 4 + N * hw * 4)),
    )(x)

    norm = norm.reshape(N, pad_hw)
    if pad_hw != hw:
        norm = norm[:, :hw]
    out = norm.reshape(N, 1, H, W)
    # TODO(synk): self.pretrained_unet(out) — external pretrained U-Net not translated.
    return out


def _reference(hsi_image, window):
    """Plain-JAX reference matching torch semantics (lower-middle median)."""
    w0, w1 = window
    xw = hsi_image[:, w0:w1]
    k = (w1 - w0 - 1) // 2
    med = jnp.sort(xw, axis=1)[:, k]                       # (N, H, W)
    mn = jnp.min(med, axis=(1, 2), keepdims=True)
    mx = jnp.max(med, axis=(1, 2), keepdims=True)
    return ((med - mn) / (mx - mn))[:, None]               # (N, 1, H, W)


if __name__ == "__main__":
    key = jax.random.PRNGKey(0)

    # Small shapes consistent with the module: hyperspectral cube + a channel window.
    N, C, H, W = 2, 32, 16, 16
    window = (8, 24)      # 16 channels; even count exercises torch's lower-middle median
    x = jax.random.normal(key, (N, C, H, W), dtype=jnp.float32)

    out = segmentation_windowing_forward(x, window)
    out = jax.block_until_ready(out)

    ref = _reference(x, window)
    assert out.shape == (N, 1, H, W), out.shape
    err = float(jnp.max(jnp.abs(out - ref)))
    assert err < 1e-5, err

    print("KERNEL_OK")
</pallas_src>

<mosaic_0001>
module attributes {stable_mosaic.version = 11 : i64} {
  func.func @_windowed_median_norm_kernel(%arg0: i32, %arg1: i32, %arg2: i32, %arg3: memref<1x16x2x128xf32, #tpu.memory_space<vmem>>, %arg4: memref<1x2x128xf32, #tpu.memory_space<vmem>>, %arg5: memref<2x128xf32, #tpu.memory_space<vmem>>, %arg6: memref<1x128xf32, #tpu.memory_space<vmem>>, %arg7: memref<1x128xf32, #tpu.memory_space<vmem>>) attributes {dimension_semantics = [#tpu.dimension_semantics<parallel>, #tpu.dimension_semantics<arbitrary>, #tpu.dimension_semantics<arbitrary>], iteration_bounds = array<i64: 2, 2, 1>, scalar_prefetch = 0 : i64, scratch_operands = 3 : i64, tpu.core_type = #tpu.core_type<tc>, window_params = [{transform_indices = @transform_0, window_bounds = array<i64: 1, 16, 2, 128>}, {transform_indices = @transform_1, window_bounds = array<i64: 1, 2, 128>}]} {
    %c0_i32 = arith.constant 0 : i32
    %0 = arith.cmpi eq, %arg1, %c0_i32 : i32
    %c0_i32_0 = arith.constant 0 : i32
    %1 = arith.cmpi eq, %arg2, %c0_i32_0 : i32
    %2 = arith.andi %0, %1 : i1
    %3 = arith.extui %2 : i1 to i32
    %c0_i32_1 = arith.constant 0 : i32
    %4 = arith.cmpi ne, %3, %c0_i32_1 : i32
    scf.if %4 {
      %cst = arith.constant 0x7F800000 : f32
      %11 = vector.broadcast %cst : f32 to vector<1x128xf32>
      %c0 = arith.constant 0 : index
      %c0_5 = arith.constant 0 : index
      %12 = vector.load %arg6[%c0, %c0_5] : memref<1x128xf32, #tpu.memory_space<vmem>>, vector<1x128xf32>
      tpu.vector_store %arg6[%c0, %c0_5], %11 {strides = array<i32>} : memref<1x128xf32, #tpu.memory_space<vmem>>, vector<1x128xf32>,
      %cst_6 = arith.constant 0xFF800000 : f32
      %13 = vector.broadcast %cst_6 : f32 to vector<1x128xf32>
      %c0_7 = arith.constant 0 : index
      %c0_8 = arith.constant 0 : index
      %14 = vector.load %arg7[%c0_7, %c0_8] : memref<1x128xf32, #tpu.memory_space<vmem>>, vector<1x128xf32>
      tpu.vector_store %arg7[%c0_7, %c0_8], %13 {strides = array<i32>} : memref<1x128xf32, #tpu.memory_space<vmem>>, vector<1x128xf32>,
    } else {
    }
    %c0_i32_2 = arith.constant 0 : i32
    %5 = arith.cmpi eq, %arg1, %c0_i32_2 : i32
    %6 = arith.extui %5 : i1 to i32
    %c0_i32_3 = arith.constant 0 : i32
    %7 = arith.cmpi ne, %6, %c0_i32_3 : i32
    scf.if %7 {
      %c0 = arith.constant 0 : index
      %c0_5 = arith.constant 0 : index
      %c0_6 = arith.constant 0 : index
      %c0_7 = arith.constant 0 : index
      %11 = vector.load %arg3[%c0, %c0_5, %c0_6, %c0_7] : memref<1x16x2x128xf32, #tpu.memory_space<vmem>>, vector<1x1x2x128xf32>
      %12 = vector.shape_cast %11 : vector<1x1x2x128xf32> to vector<2x128xf32>
      %c0_8 = arith.constant 0 : index
      %c1 = arith.constant 1 : index
      %c0_9 = arith.constant 0 : index
      %c0_10 = arith.constant 0 : index
      %13 = vector.load %arg3[%c0_8, %c1, %c0_9, %c0_10] : memref<1x16x2x128xf32, #tpu.memory_space<vmem>>, vector<1x1x2x128xf32>
      %14 = vector.shape_cast %13 : vector<1x1x2x128xf32> to vector<2x128xf32>
      %c0_11 = arith.constant 0 : index
      %c2 = arith.constant 2 : index
      %c0_12 = arith.constant 0 : index
      %c0_13 = arith.constant 0 : index
      %15 = vector.load %arg3[%c0_11, %c2, %c0_12, %c0_13] : memref<1x16x2x128xf32, #tpu.memory_space<vmem>>, vector<1x1x2x128xf32>
      %16 = vector.shape_cast %15 : vector<1x1x2x128xf32> to vector<2x128xf32>
      %c0_14 = arith.constant 0 : index
      %c3 = arith.constant 3 : index
      %c0_15 = arith.constant 0 : index
      %c0_16 = arith.constant 0 : index
      %17 = vector.load %arg3[%c0_14, %c3, %c0_15, %c0_16] : memref<1x16x2x128xf32, #tpu.memory_space<vmem>>, vector<1x1x2x128xf32>
      %18 = vector.shape_cast %17 : vector<1x1x2x128xf32> to vector<2x128xf32>
      %c0_17 = arith.constant 0 : index
      %c4 = arith.constant 4 : index
      %c0_18 = arith.constant 0 : index
      %c0_19 = arith.constant 0 : index
      %19 = vector.load %arg3[%c0_17, %c4, %c0_18, %c0_19] : memref<1x16x2x128xf32, #tpu.memory_space<vmem>>, vector<1x1x2x128xf32>
      %20 = vector.shape_cast %19 : vector<1x1x2x128xf32> to vector<2x128xf32>
      %c0_20 = arith.constant 0 : index
      %c5 = arith.constant 5 : index
      %c0_21 = arith.constant 0 : index
      %c0_22 = arith.constant 0 : index
      %21 = vector.load %arg3[%c0_20, %c5, %c0_21, %c0_22] : memref<1x16x2x128xf32, #tpu.memory_space<vmem>>, vector<1x1x2x128xf32>
      %22 = vector.shape_cast %21 : vector<1x1x2x128xf32> to vector<2x128xf32>
      %c0_23 = arith.constant 0 : index
      %c6 = arith.constant 6 : index
      %c0_24 = arith.constant 0 : index
      %c0_25 = arith.constant 0 : index
      %23 = vector.load %arg3[%c0_23, %c6, %c0_24, %c0_25] : memref<1x16x2x128xf32, #tpu.memory_space<vmem>>, vector<1x1x2x128xf32>
      %24 = vector.shape_cast %23 : vector<1x1x2x128xf32> to vector<2x128xf32>
      %c0_26 = arith.constant 0 : index
      %c7 = arith.constant 7 : index
      %c0_27 = arith.constant 0 : index
      %c0_28 = arith.constant 0 : index
      %25 = vector.load %arg3[%c0_26, %c7, %c0_27, %c0_28] : memref<1x16x2x128xf32, #tpu.memory_space<vmem>>, vector<1x1x2x128xf32>
      %26 = vector.shape_cast %25 : vector<1x1x2x128xf32> to vector<2x128xf32>
      %c0_29 = arith.constant 0 : index
      %c8 = arith.constant 8 : index
      %c0_30 = arith.constant 0 : index
      %c0_31 = arith.constant 0 : index
      %27 = vector.load %arg3[%c0_29, %c8, %c0_30, %c0_31] : memref<1x16x2x128xf32, #tpu.memory_space<vmem>>, vector<1x1x2x128xf32>
      %28 = vector.shape_cast %27 : vector<1x1x2x128xf32> to vector<2x128xf32>
      %c0_32 = arith.constant 0 : index
      %c9 = arith.constant 9 : index
      %c0_33 = arith.constant 0 : index
      %c0_34 = arith.constant 0 : index
      %29 = vector.load %arg3[%c0_32, %c9, %c0_33, %c0_34] : memref<1x16x2x128xf32, #tpu.memory_space<vmem>>, vector<1x1x2x128xf32>
      %30 = vector.shape_cast %29 : vector<1x1x2x128xf32> to vector<2x128xf32>
      %c0_35 = arith.constant 0 : index
      %c10 = arith.constant 10 : index
      %c0_36 = arith.constant 0 : index
      %c0_37 = arith.constant 0 : index
      %31 = vector.load %arg3[%c0_35, %c10, %c0_36, %c0_37] : memref<1x16x2x128xf32, #tpu.memory_space<vmem>>, vector<1x1x2x128xf32>
      %32 = vector.shape_cast %31 : vector<1x1x2x128xf32> to vector<2x128xf32>
      %c0_38 = arith.constant 0 : index
      %c11 = arith.constant 11 : index
      %c0_39 = arith.constant 0 : index
      %c0_40 = arith.constant 0 : index
      %33 = vector.load %arg3[%c0_38, %c11, %c0_39, %c0_40] : memref<1x16x2x128xf32, #tpu.memory_space<vmem>>, vector<1x1x2x128xf32>
      %34 = vector.shape_cast %33 : vector<1x1x2x128xf32> to vector<2x128xf32>
      %c0_41 = arith.constant 0 : index
      %c12 = arith.constant 12 : index
      %c0_42 = arith.constant 0 : index
      %c0_43 = arith.constant 0 : index
      %35 = vector.load %arg3[%c0_41, %c12, %c0_42, %c0_43] : memref<1x16x2x128xf32, #tpu.memory_space<vmem>>, vector<1x1x2x128xf32>
      %36 = vector.shape_cast %35 : vector<1x1x2x128xf32> to vector<2x128xf32>
      %c0_44 = arith.constant 0 : index
      %c13 = arith.constant 13 : index
      %c0_45 = arith.constant 0 : index
      %c0_46 = arith.constant 0 : index
      %37 = vector.load %arg3[%c0_44, %c13, %c0_45, %c0_46] : memref<1x16x2x128xf32, #tpu.memory_space<vmem>>, vector<1x1x2x128xf32>
      %38 = vector.shape_cast %37 : vector<1x1x2x128xf32> to vector<2x128xf32>
      %c0_47 = arith.constant 0 : index
      %c14 = arith.constant 14 : index
      %c0_48 = arith.constant 0 : index
      %c0_49 = arith.constant 0 : index
      %39 = vector.load %arg3[%c0_47, %c14, %c0_48, %c0_49] : memref<1x16x2x128xf32, #tpu.memory_space<vmem>>, vector<1x1x2x128xf32>
      %40 = vector.shape_cast %39 : vector<1x1x2x128xf32> to vector<2x128xf32>
      %c0_50 = arith.constant 0 : index
      %c15 = arith.constant 15 : index
      %c0_51 = arith.constant 0 : index
      %c0_52 = arith.constant 0 : index
      %41 = vector.load %arg3[%c0_50, %c15, %c0_51, %c0_52] : memref<1x16x2x128xf32, #tpu.memory_space<vmem>>, vector<1x1x2x128xf32>
      %42 = vector.shape_cast %41 : vector<1x1x2x128xf32> to vector<2x128xf32>
      %43 = arith.minimumf %12, %14 : vector<2x128xf32>
      %44 = arith.maximumf %12, %14 : vector<2x128xf32>
      %45 = arith.minimumf %16, %18 : vector<2x128xf32>
      %46 = arith.maximumf %16, %18 : vector<2x128xf32>
      %47 = arith.minimumf %20, %22 : vector<2x128xf32>
      %48 = arith.maximumf %20, %22 : vector<2x128xf32>
      %49 = arith.minimumf %24, %26 : vector<2x128xf32>
      %50 = arith.maximumf %24, %26 : vector<2x128xf32>
      %51 = arith.minimumf %28, %30 : vector<2x128xf32>
      %52 = arith.maximumf %28, %30 : vector<2x128xf32>
      %53 = arith.minimumf %32, %34 : vector<2x128xf32>
      %54 = arith.maximumf %32, %34 : vector<2x128xf32>
      %55 = arith.minimumf %36, %38 : vector<2x128xf32>
      %56 = arith.maximumf %36, %38 : vector<2x128xf32>
      %57 = arith.minimumf %40, %42 : vector<2x128xf32>
      %58 = arith.maximumf %40, %42 : vector<2x128xf32>
      %59 = arith.minimumf %43, %46 : vector<2x128xf32>
      %60 = arith.maximumf %43, %46 : vector<2x128xf32>
      %61 = arith.minimumf %44, %45 : vector<2x128xf32>
      %62 = arith.maximumf %44, %45 : vector<2x128xf32>
      %63 = arith.minimumf %47, %50 : vector<2x128xf32>
      %64 = arith.maximumf %47, %50 : vector<2x128xf32>
      %65 = arith.minimumf %48, %49 : vector<2x128xf32>
      %66 = arith.maximumf %48, %49 : vector<2x128xf32>
      %67 = arith.minimumf %51, %54 : vector<2x128xf32>
      %68 = arith.maximumf %51, %54 : vector<2x128xf32>
      %69 = arith.minimumf %52, %53 : vector<2x128xf32>
      %70 = arith.maximumf %52, %53 : vector<2x128xf32>
      %71 = arith.minimumf %55, %58 : vector<2x128xf32>
      %72 = arith.maximumf %55, %58 : vector<2x128xf32>
      %73 = arith.minimumf %56, %57 : vector<2x128xf32>
      %74 = arith.maximumf %56, %57 : vector<2x128xf32>
      %75 = arith.minimumf %59, %61 : vector<2x128xf32>
      %76 = arith.maximumf %59, %61 : vector<2x128xf32>
      %77 = arith.minimumf %60, %62 : vector<2x128xf32>
      %78 = arith.maximumf %60, %62 : vector<2x128xf32>
      %79 = arith.minimumf %64, %66 : vector<2x128xf32>
      %80 = arith.maximumf %64, %66 : vector<2x128xf32>
      %81 = arith.minimumf %63, %65 : vector<2x128xf32>
      %82 = arith.maximumf %63, %65 : vector<2x128xf32>
      %83 = arith.minimumf %67, %69 : vector<2x128xf32>
      %84 = arith.maximumf %67, %69 : vector<2x128xf32>
      %85 = arith.minimumf %68, %70 : vector<2x128xf32>
      %86 = arith.maximumf %68, %70 : vector<2x128xf32>
      %87 = arith.minimumf %72, %74 : vector<2x128xf32>
      %88 = arith.maximumf %72, %74 : vector<2x128xf32>
      %89 = arith.minimumf %71, %73 : vector<2x128xf32>
      %90 = arith.maximumf %71, %73 : vector<2x128xf32>
      %91 = arith.minimumf %75, %80 : vector<2x128xf32>
      %92 = arith.maximumf %75, %80 : vector<2x128xf32>
      %93 = arith.minimumf %76, %79 : vector<2x128xf32>
      %94 = arith.maximumf %76, %79 : vector<2x128xf32>
      %95 = arith.minimumf %77, %82 : vector<2x128xf32>
      %96 = arith.maximumf %77, %82 : vector<2x128xf32>
      %97 = arith.minimumf %78, %81 : vector<2x128xf32>
      %98 = arith.maximumf %78, %81 : vector<2x128xf32>
      %99 = arith.minimumf %83, %88 : vector<2x128xf32>
      %100 = arith.maximumf %83, %88 : vector<2x128xf32>
      %101 = arith.minimumf %84, %87 : vector<2x128xf32>
      %102 = arith.maximumf %84, %87 : vector<2x128xf32>
      %103 = arith.minimumf %85, %90 : vector<2x128xf32>
      %104 = arith.maximumf %85, %90 : vector<2x128xf32>
      %105 = arith.minimumf %86, %89 : vector<2x128xf32>
      %106 = arith.maximumf %86, %89 : vector<2x128xf32>
      %107 = arith.minimumf %91, %95 : vector<2x128xf32>
      %108 = arith.maximumf %91, %95 : vector<2x128xf32>
      %109 = arith.minimumf %93, %97 : vector<2x128xf32>
      %110 = arith.maximumf %93, %97 : vector<2x128xf32>
      %111 = arith.minimumf %92, %96 : vector<2x128xf32>
      %112 = arith.maximumf %92, %96 : vector<2x128xf32>
      %113 = arith.minimumf %94, %98 : vector<2x128xf32>
      %114 = arith.maximumf %94, %98 : vector<2x128xf32>
      %115 = arith.minimumf %100, %104 : vector<2x128xf32>
      %116 = arith.maximumf %100, %104 : vector<2x128xf32>
      %117 = arith.minimumf %102, %106 : vector<2x128xf32>
      %118 = arith.maximumf %102, %106 : vector<2x128xf32>
      %119 = arith.minimumf %99, %103 : vector<2x128xf32>
      %120 = arith.maximumf %99, %103 : vector<2x128xf32>
      %121 = arith.minimumf %101, %105 : vector<2x128xf32>
      %122 = arith.maximumf %101, %105 : vector<2x128xf32>
      %123 = arith.minimumf %107, %109 : vector<2x128xf32>
      %124 = arith.maximumf %107, %109 : vector<2x128xf32>
      %125 = arith.minimumf %108, %110 : vector<2x128xf32>
      %126 = arith.maximumf %108, %110 : vector<2x128xf32>
      %127 = arith.minimumf %111, %113 : vector<2x128xf32>
      %128 = arith.maximumf %111, %113 : vector<2x128xf32>
      %129 = arith.minimumf %112, %114 : vector<2x128xf32>
      %130 = arith.maximumf %112, %114 : vector<2x128xf32>
      %131 = arith.minimumf %116, %118 : vector<2x128xf32>
      %132 = arith.maximumf %116, %118 : vector<2x128xf32>
      %133 = arith.minimumf %115, %117 : vector<2x128xf32>
      %134 = arith.maximumf %115, %117 : vector<2x128xf32>
      %135 = arith.minimumf %120, %122 : vector<2x128xf32>
      %136 = arith.maximumf %120, %122 : vector<2x128xf32>
      %137 = arith.minimumf %119, %121 : vector<2x128xf32>
      %138 = arith.maximumf %119, %121 : vector<2x128xf32>
      %139 = arith.minimumf %123, %132 : vector<2x128xf32>
      %140 = arith.minimumf %124, %131 : vector<2x128xf32>
      %141 = arith.minimumf %125, %134 : vector<2x128xf32>
      %142 = arith.minimumf %126, %133 : vector<2x128xf32>
      %143 = arith.minimumf %127, %136 : vector<2x128xf32>
      %144 = arith.minimumf %128, %135 : vector<2x128xf32>
      %145 = arith.minimumf %129, %138 : vector<2x128xf32>
      %146 = arith.minimumf %130, %137 : vector<2x128xf32>
      %147 = arith.maximumf %139, %143 : vector<2x128xf32>
      %148 = arith.maximumf %140, %144 : vector<2x128xf32>
      %149 = arith.maximumf %141, %145 : vector<2x128xf32>
      %150 = arith.maximumf %142, %146 : vector<2x128xf32>
      %151 = arith.maximumf %147, %149 : vector<2x128xf32>
      %152 = arith.maximumf %148, %150 : vector<2x128xf32>
      %153 = arith.maximumf %151, %152 : vector<2x128xf32>
      %c2_i32 = arith.constant 2 : i32
      %154 = arith.muli %arg2, %c2_i32 : i32
      %c0_i32_53 = arith.constant 0 : i32
      %155 = arith.addi %154, %c0_i32_53 : i32
      %156 = arith.index_cast %155 : i32 to index
      %c0_54 = arith.constant 0 : index
      %157 = vector.load %arg5[%156, %c0_54] : memref<2x128xf32, #tpu.memory_space<vmem>>, vector<2x128xf32>
      tpu.vector_store %arg5[%156, %c0_54], %153 {strides = array<i32>} : memref<2x128xf32, #tpu.memory_space<vmem>>, vector<2x128xf32>,
      %c0_55 = arith.constant 0 : index
      %c0_56 = arith.constant 0 : index
      %158 = vector.load %arg6[%c0_55, %c0_56] : memref<1x128xf32, #tpu.memory_space<vmem>>, vector<1x128xf32>
      %cst = arith.constant dense<0x7F800000> : vector<128xf32>
      %159 = vector.multi_reduction <minimumf>, %153, %cst [0] : vector<2x128xf32> to vector<128xf32>
      %160 = vector.shape_cast %159 : vector<128xf32> to vector<1x128xf32>
      %161 = arith.minimumf %158, %160 : vector<1x128xf32>
      %c0_57 = arith.constant 0 : index
      %c0_58 = arith.constant 0 : index
      %162 = vector.load %arg6[%c0_57, %c0_58] : memref<1x128xf32, #tpu.memory_space<vmem>>, vector<1x128xf32>
      tpu.vector_store %arg6[%c0_57, %c0_58], %161 {strides = array<i32>} : memref<1x128xf32, #tpu.memory_space<vmem>>, vector<1x128xf32>,
      %c0_59 = arith.constant 0 : index
      %c0_60 = arith.constant 0 : index
      %163 = vector.load %arg7[%c0_59, %c0_60] : memref<1x128xf32, #tpu.memory_space<vmem>>, vector<1x128xf32>
      %cst_61 = arith.constant dense<0xFF800000> : vector<128xf32>
      %164 = vector.multi_reduction <maximumf>, %153, %cst_61 [0] : vector<2x128xf32> to vector<128xf32>
      %165 = vector.shape_cast %164 : vector<128xf32> to vector<1x128xf32>
      %166 = arith.maximumf %163, %165 : vector<1x128xf32>
      %c0_62 = arith.constant 0 : index
      %c0_63 = arith.constant 0 : index
      %167 = vector.load %arg7[%c0_62, %c0_63] : memref<1x128xf32, #tpu.memory_space<vmem>>, vector<1x128xf32>
      tpu.vector_store %arg7[%c0_62, %c0_63], %166 {strides = array<i32>} : memref<1x128xf32, #tpu.memory_space<vmem>>, vector<1x128xf32>,
    } else {
    }
    %c1_i32 = arith.constant 1 : i32
    %8 = arith.cmpi eq, %arg1, %c1_i32 : i32
    %9 = arith.extui %8 : i1 to i32
    %c0_i32_4 = arith.constant 0 : i32
    %10 = arith.cmpi ne, %9, %c0_i32_4 : i32
    scf.if %10 {
      %c0 = arith.constant 0 : index
      %c0_5 = arith.constant 0 : index
      %11 = vector.load %arg6[%c0, %c0_5] : memref<1x128xf32, #tpu.memory_space<vmem>>, vector<1x128xf32>
      %cst = arith.constant dense<0x7F800000> : vector<1xf32>
      %12 = vector.multi_reduction <minimumf>, %11, %cst [1] : vector<1x128xf32> to vector<1xf32>
      %13 = vector.shape_cast %12 : vector<1xf32> to vector<1x1xf32>
      %14 = vector.extract %13[0, 0] : f32 from vector<1x1xf32>
      %c0_6 = arith.constant 0 : index
      %c0_7 = arith.constant 0 : index
      %15 = vector.load %arg7[%c0_6, %c0_7] : memref<1x128xf32, #tpu.memory_space<vmem>>, vector<1x128xf32>
      %cst_8 = arith.constant dense<0xFF800000> : vector<1xf32>
      %16 = vector.multi_reduction <maximumf>, %15, %cst_8 [1] : vector<1x128xf32> to vector<1xf32>
      %17 = vector.shape_cast %16 : vector<1xf32> to vector<1x1xf32>
      %18 = vector.extract %17[0, 0] : f32 from vector<1x1xf32>
      %19 = arith.subf %18, %14 : f32
      %cst_9 = arith.constant 1.000000e+00 : f32
      %20 = arith.divf %cst_9, %19 : f32
      %c2_i32 = arith.constant 2 : i32
      %21 = arith.muli %arg2, %c2_i32 : i32
      %22 = arith.index_cast %21 : i32 to index
      %c0_10 = arith.constant 0 : index
      %23 = vector.load %arg5[%22, %c0_10] : memref<2x128xf32, #tpu.memory_space<vmem>>, vector<2x128xf32>
      %24 = vector.broadcast %14 : f32 to vector<2x128xf32>
      %25 = arith.subf %23, %24 : vector<2x128xf32>
      %26 = vector.broadcast %20 : f32 to vector<2x128xf32>
      %27 = arith.mulf %25, %26 : vector<2x128xf32>
      %c0_11 = arith.constant 0 : index
      %c0_12 = arith.constant 0 : index
      %c0_13 = arith.constant 0 : index
      %28 = vector.load %arg4[%c0_11, %c0_12, %c0_13] : memref<1x2x128xf32, #tpu.memory_space<vmem>>, vector<1x2x128xf32>
      %29 = vector.shape_cast %28 : vector<1x2x128xf32> to vector<2x128xf32>
      %30 = vector.shape_cast %27 : vector<2x128xf32> to vector<1x2x128xf32>
      tpu.vector_store %arg4[%c0_11, %c0_12, %c0_13], %30 {strides = array<i32>} : memref<1x2x128xf32, #tpu.memory_space<vmem>>, vector<1x2x128xf32>,
    } else {
    }
    return
  }
  func.func @transform_0(%arg0: i32, %arg1: i32, %arg2: i32) -> (i32, i32, i32, i32) {
    %c0_i32 = arith.constant 0 : i32
    %0 = arith.subi %c0_i32, %arg2 : i32
    %1 = arith.muli %arg1, %0 : i32
    %2 = arith.addi %arg2, %1 : i32
    %c0_i32_0 = arith.constant 0 : i32
    %c0_i32_1 = arith.constant 0 : i32
    %c0_i32_2 = arith.constant 0 : i32
    return %arg0, %c0_i32_0, %2, %c0_i32_1 : i32, i32, i32, i32
  }
  func.func @transform_1(%arg0: i32, %arg1: i32, %arg2: i32) -> (i32, i32, i32) {
    %0 = arith.muli %arg2, %arg1 : i32
    %c0_i32 = arith.constant 0 : i32
    %c0_i32_0 = arith.constant 0 : i32
    return %arg0, %0, %c0_i32 : i32, i32, i32
  }
}

</mosaic_0001>

<bundles_post_ra>
// kernel: tpu_custom_call.1
= control target key start
LH: loop header
LB: loop body
LE: loop exit
PB: predicated region body
PF: predicated region fallthrough
CT: control target
= control target key end

     0   :  { %6 = vsyncpa [#allocation6], 0  ;;  %s928_s0 = inlined_call_operand.hbm [shape: f32[2,16,2,128], index: 0, kind: input, shape index: {}]   ;;  %s929_s1 = inlined_call_operand.hbm [shape: f32[2,2,128], index: 1, kind: output, shape index: {}]  }
   0x1   :  { %8 = vsyncpa [#allocation6 + $0x1], 0 }
   0x2   :  { %9 = vsyncpa [#allocation7], 0 }
   0x3   :  { %11 = vsyncpa [#allocation7 + $0x1], 0  ;;  %s752_s6 = smov 0   ;;  %s754_s7 = smov 0  }
   0x4   :  { %s756_s8 = smov 0   ;;  %s758_s9 = smov 0  }
   0x5   :  { %s760_s10 = smov 0   ;;  %s762_s11 = smov 0  }
   0x6   :  { %s764_s12 = smov 0   ;;  %s766_s13 = smov 0  }
   0x7 LB: > { %s486_s14 = sadd.s32 4294967295, %s734_s13   ;;  %s487_s15 = sadd.s32 4294967294, %s734_s13   ;;  %s734_s13 = sphi %s766_s13, %s17_s13   ;;  %s730_s12 = sphi %s764_s12, %s941_s12   ;;  %s726_s11 = sphi %s762_s11, %s940_s11   ;;  %s722_s10 = sphi %s760_s10, %s939_s10   ;;  %s718_s9 = sphi %s758_s9, %s938_s9   ;;  %s714_s8 = sphi %s756_s8, %s937_s8   ;;  %s710_s7 = sphi %s754_s7, %s936_s7   ;;  %s706_s6 = sphi %s752_s6, %s935_s6  }
   0x8   : > { %s32_s16 = sadd.s32 1, %s726_s11  ;;  %s36_s17 = sadd.s32 1, %s730_s12 }
   0x9   : > { %p34_p0 = scmp.ge.s32.totalorder %s32_s16, 2  ;;  %s51_s18 = sadd.s32 1, %s714_s8 }
   0xa   : > { %p58_p1 = scmp.ne.s32.totalorder %s714_s8, %s710_s7  ;;  %p59_p2 = scmp.eq.s32.totalorder %s734_s13, 0 }
   0xb   : > { %s943_s16 = smov (%p34_p0, %s32_s16), 0  ;;  %s945_s17 = smov (!%p34_p0, %s36_s17), %s730_s12 }
   0xc   : > { %p803_p3 = por %p59_p2, %p58_p1  ;;  %p64_p4 = scmp.ne.s32.totalorder %s710_s7, %s706_s6 }
   0xd   : > { %p38_p5 = scmp.ge.s32.totalorder %s945_s17, 2  ;;  %p65_p6 = scmp.eq.s32.totalorder %s486_s14, 0 }
   0xe   : > { %p92_p7 = scmp.eq.s32.totalorder %s486_s14, 3  ;;  %p98_p8 = scmp.eq.s32.totalorder %s487_s15, 3 }
   0xf   : > { %s947_s17 = smov (%p38_p5, %s945_s17), 0  ;;  %p811_p9 = por %p65_p6, %p64_p4 }
  0x10   : > { %p815_p10 = por %p92_p7, %p58_p1  ;;  %s46_s22 = ssub.s32 %s730_s12, %s947_s17 }
  0x11   : > { %p821_p11 = por %p98_p8, %p64_p4  ;;  %p49_p12 = scmp.eq.s32.totalorder %s46_s22, 0 }
  0x12   : > { %p538_p13 = scmp.lt.s32.totalorder %s734_s13, 4  ;;  %s118_s24 = sand.u32 1, %s714_s8  }
  0x13   : > { %s828_s25 = scalar_select %p49_p12, %s714_s8, %s51_s18  }
  0x14   : > { %s490_s26 = sshll.u32 %s118_s24, 5  ;;  %s518_s27 = sshll.u32 %s730_s12, 9 }
  0x15   : > { %s132_s30 = scalar_lea.hbm %s928_s0, %s518_s27  ;;  %s122_s2 = scalar_lea.vmem [#allocation5], %s490_s26 }
  0x16   : > { %s133_s3 = sshll.u32 %s122_s2, 4  ;;  %p836_p0 = pnand %p538_p13, %p803_p3  ;;  %s134_s3 = int_to_ptr.vmem [resolvable:$true] %s133_s3 }
  0x17   : > { %p493_p1 = scmp.ge.s32.totalorder %s734_s13, 1  ;;  %s119_s5 = scalar_lea.sflag [#allocation6], %s118_s24 }
  0x18   : > { %p612_p2 = pneg %p836_p0  ;;  %s623_s14 = scalar_lea.vmem %s134_s3, 512 }
  0x19   : > { %p624_p4 = scmp.ne.s32.totalorder %s134_s3, %s623_s14  ;;  %s736_s15 = smov [#allocation5]  }
  0x1a   : > { %s628_s18 = sshll.u32 %s736_s15, 4  ;;  %s629_s18 = int_to_ptr.vmem [resolvable:$false] %s628_s18 }
  0x1b   : > { %p626_p5 = pnand %p624_p4, %p612_p2  ;;  %s630_s22 = scalar_lea.vmem %s629_s18, 1024 }
  0x1c   : > { %p631_p7 = scmp.lt.s32.totalorder %s134_s3, %s629_s18  ;;  %p632_p8 = scmp.lt.s32.totalorder %s630_s22, %s623_s14 }
  0x1d   : > { %p627_p6 = pneg %p626_p5 }
  0x1e   : > { %p633_p12 = por %p632_p8, %p631_p7 }
  0x20   : > { %p634_p3 = pnand %p633_p12, %p627_p6 }
  0x22   : > { %637 = shalt.err (!%p634_p3)
}
  0x23   : > { %s737_s19 = smov 32   ;;  %s738_s24 = smov 2  }
  0x24   : > { %533 = dma.hbm_to_vmem [thread:$0]  (!%p836_p0), %s132_s30, 512, %s134_s3, %s119_s5, %s737_s19, %s737_s19, %s738_s24  }
  0x25   : > { %p141_p13 = scmp.lt.s32.totalorder %s734_s13, 5 }
  0x27   : > { %p142_p2 = pnand %p493_p1, %p141_p13 }
  0x28   : > { %s849_s26 = sand.u32 (!%p142_p2), 1, %s710_s7  }
  0x29   : > { %145 = sbr.rel (%p142_p2) target bundleno = 407 (0x197), region = 24  ;;  %s494_s27 = sshll.u32 (!%p142_p2), %s849_s26, 5 }
  0x2a   : > { %s148_s28 = scalar_lea.sflag (!%p142_p2), [#allocation6], %s849_s26  ;;  %s853_s29 = scalar_lea.vmem (!%p142_p2), [#allocation5], %s494_s27 }
  0x2e   : > { %697 = dma.done.wait (%p811_p9), %s148_s28, 512  }
  0x2f   : > { %699 = vsyncadd (%p811_p9), %s148_s28, 4294966784  ;;  %s495_s30 = sshll.u32 %s849_s26, 1  ;;  %p174_p0 = scmp.eq.s32.totalorder %s718_s9, 0 }
  0x30   : > { %s861_s2 = scalar_lea.vmem [#allocation8], %s495_s30  ;;  %v739_v0 = vmov (%p174_p0), inf   ;;  %v740_v1 = vmov (%p174_p0), -inf  }
  0x31   : > { %179 = sbr.rel (!%p174_p0) target bundleno = 54 (0x36), region = 32  ;;  %180 = vst [vmem:[#allocation3] sm:$0x1] (%p174_p0), %v739_v0  ;;  %181 = vst [vmem:[#allocation4] sm:$0x1] (%p174_p0), %v740_v1 }
  0x36 PF: > { %p497_p1 = scmp.ne.s32.totalorder %s718_s9, 0 }
  0x38   : > { %184 = sbr.rel (%p497_p1) target bundleno = 112 (0x70), region = 36 }
  0x3d   : > { %v185_v2 = vld [vmem:[%s853_s29] sm:$0x3]  ;;  %v498_v3 = vld [vmem:[%s853_s29 + $0x2] sm:$0x3]  ;;  %v499_v4 = vld [vmem:[%s853_s29 + $0x4] sm:$0x3] }
  0x3e   : > { %v500_v5 = vld [vmem:[%s853_s29 + $0x6] sm:$0x3]  ;;  %v501_v6 = vld [vmem:[%s853_s29 + $0x8] sm:$0x3]  ;;  %v502_v7 = vld [vmem:[%s853_s29 + $0xa] sm:$0x3]  ;;  %v216_v8 = vmin.f32 %v185_v2, %v498_v3  ;;  %v217_v12 = vmax.f32 %v185_v2, %v498_v3 }
  0x3f   : > { %v503_v9 = vld [vmem:[%s853_s29 + $0xc] sm:$0x3]  ;;  %v504_v10 = vld [vmem:[%s853_s29 + $0xe] sm:$0x3]  ;;  %v505_v11 = vld [vmem:[%s853_s29 + $0x10] sm:$0x3]  ;;  %v218_v13 = vmin.f32 %v499_v4, %v500_v5  ;;  %v219_v14 = vmax.f32 %v499_v4, %v500_v5  ;;  %v220_v18 = vmin.f32 %v501_v6, %v502_v7  ;;  %v221_v19 = vmax.f32 %v501_v6, %v502_v7 }
  0x40   : > { %v506_v15 = vld [vmem:[%s853_s29 + $0x12] sm:$0x3]  ;;  %v507_v16 = vld [vmem:[%s853_s29 + $0x14] sm:$0x3]  ;;  %v508_v17 = vld [vmem:[%s853_s29 + $0x16] sm:$0x3]  ;;  %v222_v20 = vmin.f32 %v503_v9, %v504_v10  ;;  %v223_v21 = vmax.f32 %v503_v9, %v504_v10 }
  0x41   : > { %v509_v22 = vld [vmem:[%s853_s29 + $0x18] sm:$0x3]  ;;  %v510_v23 = vld [vmem:[%s853_s29 + $0x1a] sm:$0x3]  ;;  %v511_v24 = vld [vmem:[%s853_s29 + $0x1c] sm:$0x3]  ;;  %v224_v25 = vmin.f32 %v505_v11, %v506_v15  ;;  %v225_v26 = vmax.f32 %v505_v11, %v506_v15  ;;  %v226_v27 = vmin.f32 %v507_v16, %v508_v17  ;;  %v227_v28 = vmax.f32 %v507_v16, %v508_v17 }
  0x42   : > { %v512_v29 = vld [vmem:[%s853_s29 + $0x1e] sm:$0x3]  ;;  %v228_v30 = vmin.f32 %v509_v22, %v510_v23  ;;  %v229_v31 = vmax.f32 %v509_v22, %v510_v23  ;;  %v232_v32 = vmin.f32 %v216_v8, %v219_v14  ;;  %v233_v33 = vmax.f32 %v216_v8, %v219_v14 }
  0x43   : > { %v230_v34 = vmin.f32 %v511_v24, %v512_v29  ;;  %v231_v35 = vmax.f32 %v511_v24, %v512_v29  ;;  %v234_v36 = vmin.f32 %v217_v12, %v218_v13  ;;  %v235_v37 = vmax.f32 %v217_v12, %v218_v13 }
  0x44   : > { %v236_v38 = vmin.f32 %v220_v18, %v223_v21  ;;  %v237_v39 = vmax.f32 %v220_v18, %v223_v21  ;;  %v238_v40 = vmin.f32 %v221_v19, %v222_v20  ;;  %v239_v41 = vmax.f32 %v221_v19, %v222_v20 }
  0x45   : > { %v240_v42 = vmin.f32 %v224_v25, %v227_v28  ;;  %v241_v43 = vmax.f32 %v224_v25, %v227_v28  ;;  %v242_v44 = vmin.f32 %v225_v26, %v226_v27  ;;  %v243_v45 = vmax.f32 %v225_v26, %v226_v27 }
  0x46   : > { %v244_v46 = vmin.f32 %v228_v30, %v231_v35  ;;  %v245_v47 = vmax.f32 %v228_v30, %v231_v35  ;;  %v246_v48 = vmin.f32 %v229_v31, %v230_v34  ;;  %v247_v49 = vmax.f32 %v229_v31, %v230_v34 }
  0x47   : > { %v248_v50 = vmin.f32 %v232_v32, %v234_v36  ;;  %v249_v51 = vmax.f32 %v232_v32, %v234_v36  ;;  %v250_v52 = vmin.f32 %v233_v33, %v235_v37  ;;  %v251_v53 = vmax.f32 %v233_v33, %v235_v37 }
  0x48   : > { %v252_v54 = vmin.f32 %v237_v39, %v239_v41  ;;  %v253_v55 = vmax.f32 %v237_v39, %v239_v41  ;;  %v254_v56 = vmin.f32 %v236_v38, %v238_v40  ;;  %v255_v57 = vmax.f32 %v236_v38, %v238_v40 }
  0x49   : > { %v256_v58 = vmin.f32 %v240_v42, %v242_v44  ;;  %v257_v59 = vmax.f32 %v240_v42, %v242_v44  ;;  %v258_v60 = vmin.f32 %v241_v43, %v243_v45  ;;  %v259_v61 = vmax.f32 %v241_v43, %v243_v45 }
  0x4a   : > { %v260_v62 = vmin.f32 %v245_v47, %v247_v49  ;;  %v261_v63 = vmax.f32 %v245_v47, %v247_v49  ;;  %v262_v0 = vmin.f32 %v244_v46, %v246_v48  ;;  %v263_v1 = vmax.f32 %v244_v46, %v246_v48 }
  0x4b   : > { %v264_v2 = vmin.f32 %v248_v50, %v253_v55  ;;  %v265_v3 = vmax.f32 %v248_v50, %v253_v55  ;;  %v266_v4 = vmin.f32 %v249_v51, %v252_v54  ;;  %v267_v5 = vmax.f32 %v249_v51, %v252_v54 }
  0x4c   : > { %v268_v6 = vmin.f32 %v250_v52, %v255_v57  ;;  %v269_v7 = vmax.f32 %v250_v52, %v255_v57  ;;  %v270_v8 = vmin.f32 %v251_v53, %v254_v56  ;;  %v271_v9 = vmax.f32 %v251_v53, %v254_v56 }
  0x4d   : > { %v272_v10 = vmin.f32 %v256_v58, %v261_v63  ;;  %v273_v11 = vmax.f32 %v256_v58, %v261_v63  ;;  %v274_v12 = vmin.f32 %v257_v59, %v260_v62  ;;  %v275_v13 = vmax.f32 %v257_v59, %v260_v62 }
  0x4e   : > { %v276_v14 = vmin.f32 %v258_v60, %v263_v1  ;;  %v277_v15 = vmax.f32 %v258_v60, %v263_v1  ;;  %v278_v16 = vmin.f32 %v259_v61, %v262_v0  ;;  %v279_v17 = vmax.f32 %v259_v61, %v262_v0 }
  0x4f   : > { %v280_v18 = vmin.f32 %v264_v2, %v268_v6  ;;  %v281_v19 = vmax.f32 %v264_v2, %v268_v6  ;;  %v282_v20 = vmin.f32 %v266_v4, %v270_v8  ;;  %v283_v21 = vmax.f32 %v266_v4, %v270_v8 }
  0x50   : > { %v284_v22 = vmin.f32 %v265_v3, %v269_v7  ;;  %v285_v23 = vmax.f32 %v265_v3, %v269_v7  ;;  %v286_v24 = vmin.f32 %v267_v5, %v271_v9  ;;  %v287_v25 = vmax.f32 %v267_v5, %v271_v9 }
  0x51   : > { %v288_v26 = vmin.f32 %v273_v11, %v277_v15  ;;  %v289_v27 = vmax.f32 %v273_v11, %v277_v15  ;;  %v290_v28 = vmin.f32 %v275_v13, %v279_v17  ;;  %v291_v29 = vmax.f32 %v275_v13, %v279_v17  ;;  %v330_v13 = vld [vmem:[#allocation3] sm:$0x1] }
  0x52   : > { %v292_v30 = vmin.f32 %v272_v10, %v276_v14  ;;  %v293_v31 = vmax.f32 %v272_v10, %v276_v14  ;;  %v294_v32 = vmin.f32 %v274_v12, %v278_v16  ;;  %v295_v33 = vmax.f32 %v274_v12, %v278_v16  ;;  %v341_v14 = vld [vmem:[#allocation4] sm:$0x1] }
  0x53   : > { %v296_v34 = vmin.f32 %v280_v18, %v282_v20  ;;  %v297_v35 = vmax.f32 %v280_v18, %v282_v20  ;;  %v298_v36 = vmin.f32 %v281_v19, %v283_v21  ;;  %v299_v37 = vmax.f32 %v281_v19, %v283_v21 }
  0x54   : > { %v300_v38 = vmin.f32 %v284_v22, %v286_v24  ;;  %v301_v39 = vmax.f32 %v284_v22, %v286_v24  ;;  %v302_v40 = vmin.f32 %v285_v23, %v287_v25  ;;  %v303_v41 = vmax.f32 %v285_v23, %v287_v25 }
  0x55   : > { %v304_v42 = vmin.f32 %v289_v27, %v291_v29  ;;  %v305_v43 = vmax.f32 %v289_v27, %v291_v29  ;;  %v306_v44 = vmin.f32 %v288_v26, %v290_v28  ;;  %v307_v45 = vmax.f32 %v288_v26, %v290_v28 }
  0x56   : > { %v308_v46 = vmin.f32 %v293_v31, %v295_v33  ;;  %v309_v47 = vmax.f32 %v293_v31, %v295_v33  ;;  %v310_v48 = vmin.f32 %v292_v30, %v294_v32  ;;  %v311_v49 = vmax.f32 %v292_v30, %v294_v32 }
  0x57   : > { %v312_v50 = vmin.f32 %v296_v34, %v305_v43  ;;  %v313_v51 = vmin.f32 %v297_v35, %v304_v42  ;;  %v314_v52 = vmin.f32 %v298_v36, %v307_v45  ;;  %v315_v53 = vmin.f32 %v299_v37, %v306_v44 }
  0x58   : > { %v316_v54 = vmin.f32 %v300_v38, %v309_v47  ;;  %v317_v55 = vmin.f32 %v301_v39, %v308_v46  ;;  %v318_v56 = vmin.f32 %v302_v40, %v311_v49  ;;  %v319_v57 = vmin.f32 %v303_v41, %v310_v48 }
  0x59   : > { %vm331_vm0 = vcmask 1041408  }
  0x5a   : > { %v320_v58 = vmax.f32 %v312_v50, %v316_v54  ;;  %v321_v59 = vmax.f32 %v313_v51, %v317_v55  ;;  %v322_v60 = vmax.f32 %v314_v52, %v318_v56  ;;  %v323_v61 = vmax.f32 %v315_v53, %v319_v57 }
  0x5c   : > { %v324_v62 = vmax.f32 %v320_v58, %v322_v60  ;;  %v325_v63 = vmax.f32 %v321_v59, %v323_v61 }
  0x5e   : > { %v326_v0 = vmax.f32 %v324_v62, %v325_v63 }
  0x60   : > { %329 = vst [vmem:[#allocation2] sm:$0x3] %v326_v0  ;;  %v332_v1 = vsel %vm331_vm0, %v326_v0, inf  ;;  %v342_v2 = vsel %vm331_vm0, %v326_v0, -inf }
  0x61   : > { %v333_v3 = vrot.slane %v332_v1, 4  ;;  %v343_v4 = vrot.slane %v342_v2, 4 }
  0x63   : > { %v334_v5 = vmin.f32 %v332_v1, %v333_v3  ;;  %v344_v6 = vmax.f32 %v342_v2, %v343_v4 }
  0x65   : > { %v335_v7 = vrot.slane %v334_v5, 2  ;;  %v345_v8 = vrot.slane %v344_v6, 2 }
  0x67   : > { %v336_v9 = vmin.f32 %v334_v5, %v335_v7  ;;  %v346_v10 = vmax.f32 %v344_v6, %v345_v8 }
  0x69   : > { %v337_v11 = vrot.slane %v336_v9, 1  ;;  %v347_v12 = vrot.slane %v346_v10, 1 }
  0x6b   : > { %v338_v15 = vmin.f32 %v336_v9, %v337_v11  ;;  %v348_v16 = vmax.f32 %v346_v10, %v347_v12 }
  0x6d   : > { %v339_v17 = vmin.f32 %v330_v13, %v338_v15  ;;  %v349_v18 = vmax.f32 %v341_v14, %v348_v16 }
  0x6f   : > { %340 = vst [vmem:[#allocation3] sm:$0x1] %v339_v17  ;;  %350 = vst [vmem:[#allocation4] sm:$0x1] %v349_v18 }
  0x70 PF: > { %p513_p9 = scmp.ne.s32.totalorder %s718_s9, 1 }
  0x72   : > { %354 = sbr.rel (%p513_p9) target bundleno = 384 (0x180), region = 40 }
  0x77   : > { %v355_v19 = vld [vmem:[#allocation3] sm:$0x1]  ;;  %vm356_vm1 = vcmask 1040384   ;;  %v361_v20 = vld [vmem:[#allocation4] sm:$0x1] }
  0x78   : > { %v357_v21 = vsel %vm356_vm1, %v355_v19, inf  ;;  %v362_v22 = vsel %vm356_vm1, %v361_v20, -inf  ;;  %v372_v28 = vld [vmem:[#allocation2] sm:$0x3] }
  0x79   : > { %358 = vmin.xlane.f32.xlu0 %v357_v21 }
  0x7d   : > { %363 = vmax.xlane.f32.xlu0 %v362_v22 }
 0x102   : > { %v359_v23 = vpop.xlane.xlu0 %358 }
 0x103   : > { %520 = vpush %v359_v23 }
 0x106   : > { %v364_v24 = vpop.xlane.xlu0 %363 }
 0x107   : > { %522 = vpush %v364_v24 }
 0x134   : > { %s521_s20 = spop %520 }
 0x135   : > { %v373_v27 = vstv %s521_s20 }
 0x136   : > { %v374_v29 = vsub.f32 %v372_v28, %v373_v27 }
 0x138   : > { %s523_s3 = spop %522 }
 0x139   : > { %s366_s4 = ssub.f32 %s523_s3, %s521_s20 }
 0x13b   : > { %v367_v25 = vstv %s366_s4 }
 0x13c   : > { %608 = vrcp.f32 %v367_v25 }
 0x149   : > { %v609_v26 = vpop.eup %608 }
 0x14a   : > { %524 = vpush %v609_v26 }
 0x17b   : > { %s525_s9 = spop %524 }
 0x17c   : > { %v375_v30 = vstv %s525_s9 }
 0x17d   : > { %v376_v31 = vmul.f32 %v375_v30, %v374_v29 }
 0x17f   : > { %377 = vst [vmem:[%s861_s2] sm:$0x3] %v376_v31 }
 0x180 PF: > { %s515_s5 = sshll.u32 %s722_s10, 5  ;;  %s394_s22 = sshll.u32 %s861_s2, 4  ;;  %s395_s22 = int_to_ptr.vmem [resolvable:$true] %s394_s22 }
 0x181   : > { %s392_s18 = scalar_lea.hbm %s929_s1, %s515_s5  ;;  %s379_s19 = scalar_lea.sflag [#allocation7], %s849_s26 }
 0x182   : > { %s638_s24 = scalar_lea.vmem %s395_s22, 32  ;;  %s741_s27 = smov [#allocation8]  }
 0x183   : > { %p639_p4 = scmp.ne.s32.totalorder %s395_s22, %s638_s24  ;;  %s642_s28 = sshll.u32 %s741_s27, 4  ;;  %s643_s28 = int_to_ptr.vmem [resolvable:$false] %s642_s28 }
 0x184   : > { %s644_s29 = scalar_lea.vmem %s643_s28, 64  ;;  %p645_p7 = scmp.lt.s32.totalorder %s395_s22, %s643_s28 }
 0x185   : > { %p640_p5 = pnand %p639_p4, %p815_p10  ;;  %p646_p8 = scmp.lt.s32.totalorder %s644_s29, %s638_s24 }
 0x187   : > { %p641_p6 = pneg %p640_p5  ;;  %p647_p12 = por %p646_p8, %p645_p7 }
 0x189   : > { %p648_p3 = pnand %p647_p12, %p641_p6 }
 0x18b   : > { %651 = shalt.err (!%p648_p3)
}
 0x18c   : > { %s652_s10 = scalar_lea.hbm %s392_s18, 32  ;;  %s656_s2 = scalar_lea.hbm %s929_s1, 64 }
 0x18d   : > { %p653_p13 = scmp.ne.s32.totalorder %s392_s18, %s652_s10  ;;  %p657_p1 = scmp.lt.s32.totalorder %s392_s18, %s929_s1 }
 0x18e   : > { %p658_p9 = scmp.lt.s32.totalorder %s656_s2, %s652_s10 }
 0x18f   : > { %p654_p2 = pnand %p653_p13, %p815_p10 }
 0x190   : > { %p659_p4 = por %p658_p9, %p657_p1 }
 0x191   : > { %p655_p0 = pneg %p654_p2 }
 0x193   : > { %p660_p5 = pnand %p659_p4, %p655_p0 }
 0x195   : > { %663 = shalt.err (!%p660_p5)
}
 0x196   : > { %528 = dma.vmem_to_hbm [thread:$0]  (%p815_p10), %s395_s22, 32, %s392_s18, %s379_s19  }
 0x197 PF: > { %p539_p6 = scmp.ge.s32.totalorder %s734_s13, 2  ;;  %s406_s4 = sand.u32 1, %s706_s6  }
 0x198   : > { %s407_s9 = scalar_lea.sflag [#allocation7], %s406_s4 }
 0x199   : > { %p535_p7 = pnand %p539_p6, %p821_p11 }
 0x19b   : > { %p536_p8 = pneg %p535_p7 }
 0x19d   : > { %701 = dma.done.wait (%p536_p8), %s407_s9, 32  }
 0x19e   : > { %703 = vsyncadd (%p536_p8), %s407_s9, 4294967264  ;;  %s17_s13 = sadd.s32 1, %s734_s13   ;;  %s935_s6 = smov %s710_s7 }
 0x19f   : > { %p14_p12 = scmp.ge.s32.totalorder %s17_s13, 6   ;;  %s936_s7 = smov %s714_s8 }
 0x1a0   : > { %s937_s8 = smov %s828_s25  ;;  %s938_s9 = smov %s726_s11 }
 0x1a1   : > { %s939_s10 = smov %s730_s12  ;;  %s940_s11 = smov %s943_s16 }
 0x1a2   : > { %s941_s12 = smov %s947_s17  ;;  %16 = sbr.rel (!%p14_p12) target bundleno = 7 (0x7), region = 98 }
 0x1a7   :  { %412 = vsyncpa [#allocation6], 1 }
 0x1a8   :  { %414 = vsyncpa [#allocation6 + $0x1], 1 }
 0x1a9   :  { %415 = vsyncpa [#allocation7], 1 }
 0x1aa   :  { %417 = vsyncpa [#allocation7 + $0x1], 1 }

</bundles_post_ra>
